<compile_context>
chip_gen: v6e
topology: v6e:2x2x1
jax: 0.10.0
libtpu: 0.0.40
codegen_flags: <defaults>
</compile_context>

<pallas_src>
import functools
import math

import jax
import jax.numpy as jnp
from jax.experimental import pallas as pl
from jax.experimental.pallas import tpu as pltpu


def _round_up(n: int, m: int) -> int:
    return ((n + m - 1) // m) * m


def _pe_add_kernel(scale_ref, x_ref, pe_ref, o_ref, *, batch: int, d_model: int):
    """o[:, b*D:(b+1)*D] = x[:, b*D:(b+1)*D] + scale * pe   for each batch chunk b."""
    scale = scale_ref[0]                                     # f32 scalar from SMEM
    pe_scaled = pe_ref[...] * scale                          # (TS, D) f32, computed once
    # Static per-batch loop: keeps only a (TS, D) pe tile live (no B*D replica) and
    # issues plain lane-aligned adds; x rows are laid out [b0 d0..D-1 | b1 d0..D-1 | ...].
    for b in range(batch):
        sl = slice(b * d_model, (b + 1) * d_model)
        xb = x_ref[:, sl].astype(jnp.float32)
        o_ref[:, sl] = (xb + pe_scaled).astype(o_ref.dtype)


def _choose_seq_tile(seq_len: int, lane_width: int, itemsize: int,
                     target_block_bytes: int = 4 << 20) -> int:
    """Rows per block: multiple of the dtype's packed-sublane count, ~4 MiB of VMEM."""
    # Sub-32-bit dtypes pack rows along sublanes: f32 -> 8, bf16 -> 16, int8/fp8 -> 32.
    row_mult = 8 * max(1, 4 // itemsize)
    padded_lanes = _round_up(lane_width, 128)                # VMEM pads lanes to 128
    rows = target_block_bytes // (padded_lanes * itemsize)
    rows = max(row_mult, (rows // row_mult) * row_mult)
    return min(rows, _round_up(seq_len, row_mult))


def _seq_dim_semantics():
    """CORE_PARALLEL on v7x (2 TCs/chip) so both cores stream; 'parallel' elsewhere."""
    try:
        kind = jax.devices()[0].device_kind.lower()
    except Exception:  # pragma: no cover - defensive
        kind = ""
    if ("v7" in kind or "tpu7" in kind) and hasattr(pltpu, "CORE_PARALLEL"):
        return (pltpu.CORE_PARALLEL,)
    return ("parallel",)


def make_positional_encoding_table(d_model: int, max_len: int = 5000) -> jnp.ndarray:
    """Replicates the PyTorch __init__ pe buffer: shape (max_len, 1, d_model), float32."""
    if d_model % 2:
        raise ValueError("d_model must be even (same restriction as the PyTorch module)")
    position = jnp.arange(0, max_len, dtype=jnp.float32)[:, None]            # (max_len, 1)
    div_term = jnp.exp(
        jnp.arange(0, d_model, 2, dtype=jnp.float32) * (-math.log(10000.0) / d_model))
    angles = position * div_term                                             # (max_len, d/2)
    pe = jnp.zeros((max_len, d_model), dtype=jnp.float32)
    pe = pe.at[:, 0::2].set(jnp.sin(angles))
    pe = pe.at[:, 1::2].set(jnp.cos(angles))
    return pe[:, None, :]                                                    # (max_len, 1, d)


def positional_encoding_forward(x: jnp.ndarray,
                                scale: jnp.ndarray,
                                pe_table: jnp.ndarray) -> jnp.ndarray:
    """x: (S, B, D); scale: (1,) f32; pe_table: (max_len, 1, D) f32. Returns (S, B, D).

    NOTE: output dtype follows x.dtype (in-kernel math is f32).  PyTorch with a bf16 x
    would promote the sum to f32; here we keep x's dtype, as downstream layers expect.
    """
    S, B, D = x.shape
    max_len = pe_table.shape[0]
    assert S <= max_len, f"seq_len {S} exceeds pe max_len {max_len}"

    # Free row-major views — no HBM copies, just layout plumbing for lane-density.
    # pe stays float32: no wrapper-side cast (extra HBM pass + precision loss for bf16 x).
    x2d = x.reshape(S, B * D)
    pe2d = pe_table.reshape(max_len, D)

    ts = _choose_seq_tile(S, B * D, x.dtype.itemsize)
    grid = (pl.cdiv(S, ts),)

    itemsize = x.dtype.itemsize
    cost = pl.CostEstimate(
        flops=2 * S * B * D,                              # one mul + one add per element
        transcendentals=0,
        bytes_accessed=2 * S * B * D * itemsize + S * D * 4,
    )

    out2d = pl.pallas_call(
        functools.partial(_pe_add_kernel, batch=B, d_model=D),
        out_shape=jax.ShapeDtypeStruct((S, B * D), x.dtype),
        grid=grid,
        in_specs=[
            pl.BlockSpec(memory_space=pltpu.MemorySpace.SMEM),  # scale: (1,) f32 scalar
            pl.BlockSpec((ts, B * D), lambda i: (i, 0)),        # x slab, pipelined over seq
            pl.BlockSpec((ts, D), lambda i: (i, 0)),            # pe rows from the full table
        ],
        out_specs=pl.BlockSpec((ts, B * D), lambda i: (i, 0)),
        compiler_params=pltpu.CompilerParams(
            dimension_semantics=_seq_dim_semantics(),
            # ~4 MiB double-buffered x/out blocks + pe tiles ≈ 16–20 MiB working set;
            # 32 MiB is ample headroom and safe on v7x's 64 MiB VMEM.
            vmem_limit_bytes=32 * 1024 * 1024,
        ),
        cost_estimate=cost,
    )(scale, x2d, pe2d)

    # TODO(synk): nn.Dropout(p=0) is the identity; nonzero-p training dropout would need
    # pltpu.prng_* masking and is intentionally not implemented here.
    return out2d.reshape(S, B, D)


if __name__ == "__main__":
    # Small shapes consistent with the module's (seq, batch, d_model) usage;
    # d_model chosen lane-aligned (multiple of 128), as in realistic configs.
    SEQ, BATCH, D_MODEL, MAX_LEN = 8, 2, 128, 64

    key = jax.random.PRNGKey(0)
    x = jax.random.normal(key, (SEQ, BATCH, D_MODEL), dtype=jnp.float32)

    # Deterministic parameter init: scale = ones(1), as in nn.Parameter(torch.ones(1)).
    scale = jnp.ones((1,), dtype=jnp.float32)
    pe_table = make_positional_encoding_table(D_MODEL, MAX_LEN)

    out = jax.block_until_ready(positional_encoding_forward(x, scale, pe_table))

    # Plain-JAX reference check.
    ref = x + scale[0] * pe_table[:SEQ]
    assert out.shape == x.shape
    assert jnp.allclose(out, ref, atol=1e-6, rtol=1e-6)

    print("KERNEL_OK")
</pallas_src>

<mosaic_0001>
module attributes {stable_mosaic.version = 11 : i64} {
  func.func @_pe_add_kernel(%arg0: i32, %arg1: memref<1xf32, #tpu.memory_space<smem>>, %arg2: memref<8x256xf32, #tpu.memory_space<vmem>>, %arg3: memref<8x128xf32, #tpu.memory_space<vmem>>, %arg4: memref<8x256xf32, #tpu.memory_space<vmem>>) attributes {dimension_semantics = [#tpu.dimension_semantics<parallel>], iteration_bounds = array<i64: 1>, scalar_prefetch = 0 : i64, scratch_operands = 0 : i64, tpu.core_type = #tpu.core_type<tc>, window_params = [{transform_indices = @transform_0, window_bounds = array<i64: 1>}, {transform_indices = @transform_1, window_bounds = array<i64: 8, 256>}, {transform_indices = @transform_2, window_bounds = array<i64: 8, 128>}, {transform_indices = @transform_3, window_bounds = array<i64: 8, 256>}]} {
    %c0 = arith.constant 0 : index
    %0 = memref.load %arg1[%c0] : memref<1xf32, #tpu.memory_space<smem>>
    %c0_0 = arith.constant 0 : index
    %c0_1 = arith.constant 0 : index
    %1 = vector.load %arg3[%c0_0, %c0_1] : memref<8x128xf32, #tpu.memory_space<vmem>>, vector<8x128xf32>
    %2 = vector.broadcast %0 : f32 to vector<8x128xf32>
    %3 = arith.mulf %1, %2 : vector<8x128xf32>
    %c0_2 = arith.constant 0 : index
    %c0_3 = arith.constant 0 : index
    %4 = vector.load %arg2[%c0_2, %c0_3] : memref<8x256xf32, #tpu.memory_space<vmem>>, vector<8x128xf32>
    %5 = arith.addf %4, %3 : vector<8x128xf32>
    %c0_4 = arith.constant 0 : index
    %c0_5 = arith.constant 0 : index
    %6 = vector.load %arg4[%c0_4, %c0_5] : memref<8x256xf32, #tpu.memory_space<vmem>>, vector<8x128xf32>
    tpu.vector_store %arg4[%c0_4, %c0_5], %5 {strides = array<i32>} : memref<8x256xf32, #tpu.memory_space<vmem>>, vector<8x128xf32>,
    %c0_6 = arith.constant 0 : index
    %c128 = arith.constant 128 : index
    %7 = vector.load %arg2[%c0_6, %c128] : memref<8x256xf32, #tpu.memory_space<vmem>>, vector<8x128xf32>
    %8 = arith.addf %7, %3 : vector<8x128xf32>
    %c0_7 = arith.constant 0 : index
    %c128_8 = arith.constant 128 : index
    %9 = vector.load %arg4[%c0_7, %c128_8] : memref<8x256xf32, #tpu.memory_space<vmem>>, vector<8x128xf32>
    tpu.vector_store %arg4[%c0_7, %c128_8], %8 {strides = array<i32>} : memref<8x256xf32, #tpu.memory_space<vmem>>, vector<8x128xf32>,
    return
  }
  func.func @transform_0(%arg0: i32) -> i32 {
    %c0_i32 = arith.constant 0 : i32
    %c0_i32_0 = arith.constant 0 : i32
    return %c0_i32 : i32
  }
  func.func @transform_1(%arg0: i32) -> (i32, i32) {
    %c0_i32 = arith.constant 0 : i32
    %c0_i32_0 = arith.constant 0 : i32
    return %arg0, %c0_i32 : i32, i32
  }
  func.func @transform_2(%arg0: i32) -> (i32, i32) {
    %c0_i32 = arith.constant 0 : i32
    %c0_i32_0 = arith.constant 0 : i32
    return %arg0, %c0_i32 : i32, i32
  }
  func.func @transform_3(%arg0: i32) -> (i32, i32) {
    %c0_i32 = arith.constant 0 : i32
    %c0_i32_0 = arith.constant 0 : i32
    return %arg0, %c0_i32 : i32, i32
  }
}

</mosaic_0001>

<bundles_post_ra>
// kernel: tpu_custom_call.1
= control target key start
LH: loop header
LB: loop body
LE: loop exit
PB: predicated region body
PF: predicated region fallthrough
CT: control target
= control target key end

     0   :  { %9 = vsyncpa [#allocation4], 0  ;;  %s170_s0 = inlined_call_operand.<no memory space> [shape: f32[1], index: 0, kind: input, shape index: {}]   ;;  %s171_s1 = inlined_call_operand.hbm [shape: f32[8,256], index: 1, kind: input, shape index: {}]   ;;  %s172_s2 = inlined_call_operand.hbm [shape: f32[64,128], index: 2, kind: input, shape index: {}]   ;;  %s173_s3 = inlined_call_operand.hbm [shape: f32[8,256], index: 3, kind: output, shape index: {}]  }
   0x1   :  { %10 = vsyncpa [#allocation7], 0 }
   0x2   :  { %11 = vsyncpa [#allocation5], 0  ;;  %s135_s12 = smov [#allocation3]   ;;  %s136_s14 = smov [#allocation6]  }
   0x3   :  { %s20_s13 = sshll.u32 %s135_s12, 4  ;;  %s30_s15 = sshll.u32 %s136_s14, 4  ;;  %s21_s13 = int_to_ptr.vmem [resolvable:$true] %s20_s13  ;;  %s31_s15 = int_to_ptr.vmem [resolvable:$true] %s30_s15 }
   0x4   :  { %s77_s16 = scalar_lea.vmem %s21_s13, 256  ;;  %p82_p1 = scmp.lt.s32.totalorder %s21_s13, %s21_s13 }
   0x5   :  { %p78_p0 = scmp.ne.s32.totalorder %s21_s13, %s77_s16  ;;  %p83_p2 = scmp.lt.s32.totalorder %s77_s16, %s77_s16 }
   0x7   :  { %p84_p3 = por %p83_p2, %p82_p1 }
   0x9   :  { %p85_p4 = pnand %p84_p3, %p78_p0 }
   0xb   :  { %88 = shalt.err (!%p85_p4)
}
   0xc   :  { %23 = dma.hbm_to_vmem [thread:$0]  %s171_s1, 256, %s21_s13, [#allocation4]  }
   0xd   :  { %s97_s19 = scalar_lea.vmem %s31_s15, 128  ;;  %p102_p6 = scmp.lt.s32.totalorder %s31_s15, %s31_s15 }
   0xe   :  { %p98_p5 = scmp.ne.s32.totalorder %s31_s15, %s97_s19  ;;  %p103_p7 = scmp.lt.s32.totalorder %s97_s19, %s97_s19 }
  0x10   :  { %p104_p8 = por %p103_p7, %p102_p6 }
  0x12   :  { %p105_p9 = pnand %p104_p8, %p98_p5 }
  0x14   :  { %108 = shalt.err (!%p105_p9)
}
  0x15   :  { %33 = dma.hbm_to_vmem [thread:$0]  %s172_s2, 128, %s31_s15, [#allocation7]  }
  0x16   :  { %129 = dma.done.wait [#allocation4], 256  }
  0x17   :  { %130 = vsyncadd [#allocation4], 4294967040 }
  0x18   :  { %131 = dma.done.wait [#allocation7], 128  }
  0x19   :  { %132 = vsyncadd [#allocation7], 4294967168  ;;  %v42_v0 = vstv %s170_s0  ;;  %v41_v1 = vld [vmem:[#allocation6] sm:$0xff]  ;;  %v44_v2 = vld [vmem:[#allocation3] sm:$0xff]  ;;  %s137_s1 = smov [#allocation8]  }
  0x1a   :  { %v47_v3 = vld [vmem:[#allocation3 + $0x8] sm:$0xff]  ;;  %s56_s24 = sshll.u32 %s137_s1, 4  ;;  %v43_v4 = vmul.f32 %v42_v0, %v41_v1  ;;  %s57_s24 = int_to_ptr.vmem [resolvable:$true] %s56_s24 }
  0x1b   :  { %s109_s2 = scalar_lea.vmem %s57_s24, 256  ;;  %p114_p11 = scmp.lt.s32.totalorder %s57_s24, %s57_s24 }
  0x1c   :  { %v45_v5 = vadd.f32 %v44_v2, %v43_v4  ;;  %v48_v6 = vadd.f32 %v47_v3, %v43_v4  ;;  %p110_p10 = scmp.ne.s32.totalorder %s57_s24, %s109_s2  ;;  %p115_p12 = scmp.lt.s32.totalorder %s109_s2, %s109_s2 }
  0x1e   :  { %46 = vst [vmem:[#allocation8] sm:$0xff] %v45_v5  ;;  %49 = vst [vmem:[#allocation8 + $0x8] sm:$0xff] %v48_v6  ;;  %p116_p13 = por %p115_p12, %p114_p11 }
  0x20   :  { %p117_p0 = pnand %p116_p13, %p110_p10 }
  0x22   :  { %120 = shalt.err (!%p117_p0)
}
  0x23   :  { %59 = dma.vmem_to_hbm [thread:$0]  %s57_s24, 256, %s173_s3, [#allocation5]  }
  0x24   :  { %133 = dma.done.wait [#allocation5], 256  }
  0x25   :  { %134 = vsyncadd [#allocation5], 4294967040 }
  0x26   :  { %63 = vsyncpa [#allocation4], 1 }
  0x27   :  { %64 = vsyncpa [#allocation7], 1 }
  0x28   :  { %65 = vsyncpa [#allocation5], 1 }

</bundles_post_ra>
